<compile_context>
chip_gen: v7x
topology: tpu7x:2x2x1
jax: 0.10.0
libtpu: 0.0.40
codegen_flags: <defaults>
</compile_context>

<pallas_src>
import jax
import jax.numpy as jnp
from jax.experimental import pallas as pl
from jax.experimental.pallas import tpu as pltpu


def _rank_fwd_kernel(ids_ref, emb_ref, w_ref, out_ref, s_ref):
    # ids_ref : [bs, L]          int32 (VMEM), L = max_k padded to a lane multiple
    # emb_ref : [num_class, dim] f32   (VMEM)
    # w_ref   : [1, dim]         f32   (VMEM)  nn.Linear(dim, 1, bias=False) weight
    # out_ref : [bs, L]          f32   (VMEM)  lane-dense padded logits
    # s_ref   : [num_class, 1]   f32   (VMEM scratch) per-class score table
    num_class = emb_ref.shape[0]

    # --- Stage 1 (fused): per-class scores  s[c] = tanh(emb[c]) . w ------------
    # tanh on the EUP, multiply on the VPU, lane reduction on the XLU.  No MXU
    # mat-vec with a width-1 output, no 128-row class padding.
    act = jnp.tanh(emb_ref[...])                                   # [C, dim]
    s_ref[...] = jnp.sum(act * w_ref[...], axis=-1, keepdims=True)  # [C, 1]

    # --- Stage 2 (fused): lookup  out[b, k] = s[ids[b, k]] ---------------------
    # Fully unrolled select chain (valid while num_class is a small static
    # constant), split round-robin over 4 independent accumulators so the VALU
    # dependency chain is ~num_class/4 deep instead of num_class.
    ids = ids_ref[...]
    n_acc = 4
    accs = [jnp.zeros(ids.shape, jnp.float32) for _ in range(n_acc)]
    for c in range(num_class):
        sc = s_ref[c:c + 1, 0:1]                    # (1,1) tile, broadcast below
        a = c % n_acc
        accs[a] = accs[a] + jnp.where(ids == c, sc, 0.0)
    # ids outside [0, num_class) (never occur per spec) and the lane padding
    # contribute 0.0 here; the padding is sliced off in the wrapper.
    out_ref[...] = (accs[0] + accs[1]) + (accs[2] + accs[3])


@jax.jit
def rank_model_forward(inputs, emb_table, w_score):
    """Fused RankModel forward.

    inputs   : [bs, max_k] integer class ids
    emb_table: [num_class, dim] f32 embedding weight
    w_score  : nn.Linear(dim, 1, bias=False) weight, any of (1, dim)/(dim, 1)/(dim,)
    returns  : [bs, max_k] f32 logits == score(tanh(embedding(inputs))).squeeze(-1)
    """
    bs, max_k = inputs.shape
    num_class, dim = emb_table.shape

    # Lane-dense padded width so the kernel's output store is an unmasked vst.
    L = 128 * pl.cdiv(max_k, 128)
    ids = inputs.astype(jnp.int32)
    if L != max_k:
        ids = jnp.pad(ids, ((0, 0), (0, L - max_k)))   # pad ids with class 0

    out_p = pl.pallas_call(
        _rank_fwd_kernel,
        out_shape=jax.ShapeDtypeStruct((bs, L), jnp.float32),
        in_specs=[
            pl.BlockSpec(memory_space=pltpu.VMEM),    # ids  [bs, L]
            pl.BlockSpec(memory_space=pltpu.VMEM),    # emb  [num_class, dim] (~19 KiB)
            pl.BlockSpec(memory_space=pltpu.VMEM),    # w    [1, dim]
        ],
        out_specs=pl.BlockSpec(memory_space=pltpu.VMEM),
        scratch_shapes=[pltpu.VMEM((num_class, 1), jnp.float32)],
    )(ids, emb_table.astype(jnp.float32),
      w_score.astype(jnp.float32).reshape(1, dim))

    return out_p[:, :max_k] if L != max_k else out_p


if __name__ == "__main__":
    num_class, max_k, dim = 19, 11, 256
    bs = 2

    key = jax.random.PRNGKey(0)
    k_emb, k_w, k_in = jax.random.split(key, 3)

    # nn.init.uniform_(embeddings.weight, -0.01, 0.01)
    emb_table = jax.random.uniform(k_emb, (num_class, dim), jnp.float32,
                                   minval=-0.01, maxval=0.01)
    # nn.Linear(dim, 1, bias=False) weight, PyTorch layout (out_features, in_features)
    bound = 1.0 / (dim ** 0.5)
    w_score = jax.random.uniform(k_w, (1, dim), jnp.float32,
                                 minval=-bound, maxval=bound)

    # inputs: [bs, max_k] class ids in [0, num_class)
    inputs = jax.random.randint(k_in, (bs, max_k), 0, num_class, jnp.int32)

    # Single fused kernel launch per forward call.
    out = rank_model_forward(inputs, emb_table, w_score)
    out = jax.block_until_ready(out)

    # Pure-JAX reference with the original module semantics.
    ref = jnp.einsum("bkd,d->bk", jnp.tanh(emb_table[inputs]), w_score[0])
    assert out.shape == (bs, max_k)
    assert jnp.allclose(out, ref, atol=1e-5, rtol=1e-5), "mismatch vs reference"

    print("KERNEL_OK")
</pallas_src>

<mosaic_0001>
module attributes {stable_mosaic.version = 11 : i64} {
  func.func @_rank_fwd_kernel(%arg0: memref<2x128xi32, #tpu.memory_space<vmem>>, %arg1: memref<19x256xf32, #tpu.memory_space<vmem>>, %arg2: memref<1x256xf32, #tpu.memory_space<vmem>>, %arg3: memref<2x128xf32, #tpu.memory_space<vmem>>, %arg4: memref<19x1xf32, #tpu.memory_space<vmem>>) attributes {dimension_semantics = [], scalar_prefetch = 0 : i64, scratch_operands = 1 : i64, tpu.core_type = #tpu.core_type<tc>} {
    %c0 = arith.constant 0 : index
    %c0_0 = arith.constant 0 : index
    %0 = vector.load %arg1[%c0, %c0_0] : memref<19x256xf32, #tpu.memory_space<vmem>>, vector<19x256xf32>
    %1 = math.tanh %0 : vector<19x256xf32>
    %c0_1 = arith.constant 0 : index
    %c0_2 = arith.constant 0 : index
    %2 = vector.load %arg2[%c0_1, %c0_2] : memref<1x256xf32, #tpu.memory_space<vmem>>, vector<1x256xf32>
    %3 = vector.broadcast %2 : vector<1x256xf32> to vector<19x256xf32>
    %4 = arith.mulf %1, %3 : vector<19x256xf32>
    %cst = arith.constant dense<0.000000e+00> : vector<19xf32>
    %5 = vector.multi_reduction <add>, %4, %cst [1] : vector<19x256xf32> to vector<19xf32>
    %6 = vector.shape_cast %5 : vector<19xf32> to vector<19x1xf32>
    %c0_3 = arith.constant 0 : index
    %c0_4 = arith.constant 0 : index
    %7 = vector.load %arg4[%c0_3, %c0_4] : memref<19x1xf32, #tpu.memory_space<vmem>>, vector<19x1xf32>
    tpu.vector_store %arg4[%c0_3, %c0_4], %6 {strides = array<i32>} : memref<19x1xf32, #tpu.memory_space<vmem>>, vector<19x1xf32>,
    %c0_5 = arith.constant 0 : index
    %c0_6 = arith.constant 0 : index
    %8 = vector.load %arg0[%c0_5, %c0_6] : memref<2x128xi32, #tpu.memory_space<vmem>>, vector<2x128xi32>
    %cst_7 = arith.constant 0.000000e+00 : f32
    %9 = vector.broadcast %cst_7 : f32 to vector<2x128xf32>
    %cst_8 = arith.constant 0.000000e+00 : f32
    %10 = vector.broadcast %cst_8 : f32 to vector<2x128xf32>
    %cst_9 = arith.constant 0.000000e+00 : f32
    %11 = vector.broadcast %cst_9 : f32 to vector<2x128xf32>
    %cst_10 = arith.constant 0.000000e+00 : f32
    %12 = vector.broadcast %cst_10 : f32 to vector<2x128xf32>
    %c0_11 = arith.constant 0 : index
    %c0_12 = arith.constant 0 : index
    %13 = vector.load %arg4[%c0_11, %c0_12] : memref<19x1xf32, #tpu.memory_space<vmem>>, vector<1x1xf32>
    %c0_i32 = arith.constant 0 : i32
    %14 = vector.broadcast %c0_i32 : i32 to vector<2x128xi32>
    %15 = arith.cmpi eq, %8, %14 : vector<2x128xi32>
    %cst_13 = arith.constant 0.000000e+00 : f32
    %16 = vector.shape_cast %13 : vector<1x1xf32> to vector<1x1xf32>
    %17 = vector.broadcast %16 : vector<1x1xf32> to vector<2x128xf32>
    %18 = vector.broadcast %cst_13 : f32 to vector<2x128xf32>
    %19 = arith.select %15, %17, %18 : vector<2x128xi1>, vector<2x128xf32>
    %20 = arith.addf %9, %19 : vector<2x128xf32>
    %c1 = arith.constant 1 : index
    %c0_14 = arith.constant 0 : index
    %21 = vector.load %arg4[%c1, %c0_14] : memref<19x1xf32, #tpu.memory_space<vmem>>, vector<1x1xf32>
    %c1_i32 = arith.constant 1 : i32
    %22 = vector.broadcast %c1_i32 : i32 to vector<2x128xi32>
    %23 = arith.cmpi eq, %8, %22 : vector<2x128xi32>
    %cst_15 = arith.constant 0.000000e+00 : f32
    %24 = vector.shape_cast %21 : vector<1x1xf32> to vector<1x1xf32>
    %25 = vector.broadcast %24 : vector<1x1xf32> to vector<2x128xf32>
    %26 = vector.broadcast %cst_15 : f32 to vector<2x128xf32>
    %27 = arith.select %23, %25, %26 : vector<2x128xi1>, vector<2x128xf32>
    %28 = arith.addf %10, %27 : vector<2x128xf32>
    %c2 = arith.constant 2 : index
    %c0_16 = arith.constant 0 : index
    %29 = vector.load %arg4[%c2, %c0_16] : memref<19x1xf32, #tpu.memory_space<vmem>>, vector<1x1xf32>
    %c2_i32 = arith.constant 2 : i32
    %30 = vector.broadcast %c2_i32 : i32 to vector<2x128xi32>
    %31 = arith.cmpi eq, %8, %30 : vector<2x128xi32>
    %cst_17 = arith.constant 0.000000e+00 : f32
    %32 = vector.shape_cast %29 : vector<1x1xf32> to vector<1x1xf32>
    %33 = vector.broadcast %32 : vector<1x1xf32> to vector<2x128xf32>
    %34 = vector.broadcast %cst_17 : f32 to vector<2x128xf32>
    %35 = arith.select %31, %33, %34 : vector<2x128xi1>, vector<2x128xf32>
    %36 = arith.addf %11, %35 : vector<2x128xf32>
    %c3 = arith.constant 3 : index
    %c0_18 = arith.constant 0 : index
    %37 = vector.load %arg4[%c3, %c0_18] : memref<19x1xf32, #tpu.memory_space<vmem>>, vector<1x1xf32>
    %c3_i32 = arith.constant 3 : i32
    %38 = vector.broadcast %c3_i32 : i32 to vector<2x128xi32>
    %39 = arith.cmpi eq, %8, %38 : vector<2x128xi32>
    %cst_19 = arith.constant 0.000000e+00 : f32
    %40 = vector.shape_cast %37 : vector<1x1xf32> to vector<1x1xf32>
    %41 = vector.broadcast %40 : vector<1x1xf32> to vector<2x128xf32>
    %42 = vector.broadcast %cst_19 : f32 to vector<2x128xf32>
    %43 = arith.select %39, %41, %42 : vector<2x128xi1>, vector<2x128xf32>
    %44 = arith.addf %12, %43 : vector<2x128xf32>
    %c4 = arith.constant 4 : index
    %c0_20 = arith.constant 0 : index
    %45 = vector.load %arg4[%c4, %c0_20] : memref<19x1xf32, #tpu.memory_space<vmem>>, vector<1x1xf32>
    %c4_i32 = arith.constant 4 : i32
    %46 = vector.broadcast %c4_i32 : i32 to vector<2x128xi32>
    %47 = arith.cmpi eq, %8, %46 : vector<2x128xi32>
    %cst_21 = arith.constant 0.000000e+00 : f32
    %48 = vector.shape_cast %45 : vector<1x1xf32> to vector<1x1xf32>
    %49 = vector.broadcast %48 : vector<1x1xf32> to vector<2x128xf32>
    %50 = vector.broadcast %cst_21 : f32 to vector<2x128xf32>
    %51 = arith.select %47, %49, %50 : vector<2x128xi1>, vector<2x128xf32>
    %52 = arith.addf %20, %51 : vector<2x128xf32>
    %c5 = arith.constant 5 : index
    %c0_22 = arith.constant 0 : index
    %53 = vector.load %arg4[%c5, %c0_22] : memref<19x1xf32, #tpu.memory_space<vmem>>, vector<1x1xf32>
    %c5_i32 = arith.constant 5 : i32
    %54 = vector.broadcast %c5_i32 : i32 to vector<2x128xi32>
    %55 = arith.cmpi eq, %8, %54 : vector<2x128xi32>
    %cst_23 = arith.constant 0.000000e+00 : f32
    %56 = vector.shape_cast %53 : vector<1x1xf32> to vector<1x1xf32>
    %57 = vector.broadcast %56 : vector<1x1xf32> to vector<2x128xf32>
    %58 = vector.broadcast %cst_23 : f32 to vector<2x128xf32>
    %59 = arith.select %55, %57, %58 : vector<2x128xi1>, vector<2x128xf32>
    %60 = arith.addf %28, %59 : vector<2x128xf32>
    %c6 = arith.constant 6 : index
    %c0_24 = arith.constant 0 : index
    %61 = vector.load %arg4[%c6, %c0_24] : memref<19x1xf32, #tpu.memory_space<vmem>>, vector<1x1xf32>
    %c6_i32 = arith.constant 6 : i32
    %62 = vector.broadcast %c6_i32 : i32 to vector<2x128xi32>
    %63 = arith.cmpi eq, %8, %62 : vector<2x128xi32>
    %cst_25 = arith.constant 0.000000e+00 : f32
    %64 = vector.shape_cast %61 : vector<1x1xf32> to vector<1x1xf32>
    %65 = vector.broadcast %64 : vector<1x1xf32> to vector<2x128xf32>
    %66 = vector.broadcast %cst_25 : f32 to vector<2x128xf32>
    %67 = arith.select %63, %65, %66 : vector<2x128xi1>, vector<2x128xf32>
    %68 = arith.addf %36, %67 : vector<2x128xf32>
    %c7 = arith.constant 7 : index
    %c0_26 = arith.constant 0 : index
    %69 = vector.load %arg4[%c7, %c0_26] : memref<19x1xf32, #tpu.memory_space<vmem>>, vector<1x1xf32>
    %c7_i32 = arith.constant 7 : i32
    %70 = vector.broadcast %c7_i32 : i32 to vector<2x128xi32>
    %71 = arith.cmpi eq, %8, %70 : vector<2x128xi32>
    %cst_27 = arith.constant 0.000000e+00 : f32
    %72 = vector.shape_cast %69 : vector<1x1xf32> to vector<1x1xf32>
    %73 = vector.broadcast %72 : vector<1x1xf32> to vector<2x128xf32>
    %74 = vector.broadcast %cst_27 : f32 to vector<2x128xf32>
    %75 = arith.select %71, %73, %74 : vector<2x128xi1>, vector<2x128xf32>
    %76 = arith.addf %44, %75 : vector<2x128xf32>
    %c8 = arith.constant 8 : index
    %c0_28 = arith.constant 0 : index
    %77 = vector.load %arg4[%c8, %c0_28] : memref<19x1xf32, #tpu.memory_space<vmem>>, vector<1x1xf32>
    %c8_i32 = arith.constant 8 : i32
    %78 = vector.broadcast %c8_i32 : i32 to vector<2x128xi32>
    %79 = arith.cmpi eq, %8, %78 : vector<2x128xi32>
    %cst_29 = arith.constant 0.000000e+00 : f32
    %80 = vector.shape_cast %77 : vector<1x1xf32> to vector<1x1xf32>
    %81 = vector.broadcast %80 : vector<1x1xf32> to vector<2x128xf32>
    %82 = vector.broadcast %cst_29 : f32 to vector<2x128xf32>
    %83 = arith.select %79, %81, %82 : vector<2x128xi1>, vector<2x128xf32>
    %84 = arith.addf %52, %83 : vector<2x128xf32>
    %c9 = arith.constant 9 : index
    %c0_30 = arith.constant 0 : index
    %85 = vector.load %arg4[%c9, %c0_30] : memref<19x1xf32, #tpu.memory_space<vmem>>, vector<1x1xf32>
    %c9_i32 = arith.constant 9 : i32
    %86 = vector.broadcast %c9_i32 : i32 to vector<2x128xi32>
    %87 = arith.cmpi eq, %8, %86 : vector<2x128xi32>
    %cst_31 = arith.constant 0.000000e+00 : f32
    %88 = vector.shape_cast %85 : vector<1x1xf32> to vector<1x1xf32>
    %89 = vector.broadcast %88 : vector<1x1xf32> to vector<2x128xf32>
    %90 = vector.broadcast %cst_31 : f32 to vector<2x128xf32>
    %91 = arith.select %87, %89, %90 : vector<2x128xi1>, vector<2x128xf32>
    %92 = arith.addf %60, %91 : vector<2x128xf32>
    %c10 = arith.constant 10 : index
    %c0_32 = arith.constant 0 : index
    %93 = vector.load %arg4[%c10, %c0_32] : memref<19x1xf32, #tpu.memory_space<vmem>>, vector<1x1xf32>
    %c10_i32 = arith.constant 10 : i32
    %94 = vector.broadcast %c10_i32 : i32 to vector<2x128xi32>
    %95 = arith.cmpi eq, %8, %94 : vector<2x128xi32>
    %cst_33 = arith.constant 0.000000e+00 : f32
    %96 = vector.shape_cast %93 : vector<1x1xf32> to vector<1x1xf32>
    %97 = vector.broadcast %96 : vector<1x1xf32> to vector<2x128xf32>
    %98 = vector.broadcast %cst_33 : f32 to vector<2x128xf32>
    %99 = arith.select %95, %97, %98 : vector<2x128xi1>, vector<2x128xf32>
    %100 = arith.addf %68, %99 : vector<2x128xf32>
    %c11 = arith.constant 11 : index
    %c0_34 = arith.constant 0 : index
    %101 = vector.load %arg4[%c11, %c0_34] : memref<19x1xf32, #tpu.memory_space<vmem>>, vector<1x1xf32>
    %c11_i32 = arith.constant 11 : i32
    %102 = vector.broadcast %c11_i32 : i32 to vector<2x128xi32>
    %103 = arith.cmpi eq, %8, %102 : vector<2x128xi32>
    %cst_35 = arith.constant 0.000000e+00 : f32
    %104 = vector.shape_cast %101 : vector<1x1xf32> to vector<1x1xf32>
    %105 = vector.broadcast %104 : vector<1x1xf32> to vector<2x128xf32>
    %106 = vector.broadcast %cst_35 : f32 to vector<2x128xf32>
    %107 = arith.select %103, %105, %106 : vector<2x128xi1>, vector<2x128xf32>
    %108 = arith.addf %76, %107 : vector<2x128xf32>
    %c12 = arith.constant 12 : index
    %c0_36 = arith.constant 0 : index
    %109 = vector.load %arg4[%c12, %c0_36] : memref<19x1xf32, #tpu.memory_space<vmem>>, vector<1x1xf32>
    %c12_i32 = arith.constant 12 : i32
    %110 = vector.broadcast %c12_i32 : i32 to vector<2x128xi32>
    %111 = arith.cmpi eq, %8, %110 : vector<2x128xi32>
    %cst_37 = arith.constant 0.000000e+00 : f32
    %112 = vector.shape_cast %109 : vector<1x1xf32> to vector<1x1xf32>
    %113 = vector.broadcast %112 : vector<1x1xf32> to vector<2x128xf32>
    %114 = vector.broadcast %cst_37 : f32 to vector<2x128xf32>
    %115 = arith.select %111, %113, %114 : vector<2x128xi1>, vector<2x128xf32>
    %116 = arith.addf %84, %115 : vector<2x128xf32>
    %c13 = arith.constant 13 : index
    %c0_38 = arith.constant 0 : index
    %117 = vector.load %arg4[%c13, %c0_38] : memref<19x1xf32, #tpu.memory_space<vmem>>, vector<1x1xf32>
    %c13_i32 = arith.constant 13 : i32
    %118 = vector.broadcast %c13_i32 : i32 to vector<2x128xi32>
    %119 = arith.cmpi eq, %8, %118 : vector<2x128xi32>
    %cst_39 = arith.constant 0.000000e+00 : f32
    %120 = vector.shape_cast %117 : vector<1x1xf32> to vector<1x1xf32>
    %121 = vector.broadcast %120 : vector<1x1xf32> to vector<2x128xf32>
    %122 = vector.broadcast %cst_39 : f32 to vector<2x128xf32>
    %123 = arith.select %119, %121, %122 : vector<2x128xi1>, vector<2x128xf32>
    %124 = arith.addf %92, %123 : vector<2x128xf32>
    %c14 = arith.constant 14 : index
    %c0_40 = arith.constant 0 : index
    %125 = vector.load %arg4[%c14, %c0_40] : memref<19x1xf32, #tpu.memory_space<vmem>>, vector<1x1xf32>
    %c14_i32 = arith.constant 14 : i32
    %126 = vector.broadcast %c14_i32 : i32 to vector<2x128xi32>
    %127 = arith.cmpi eq, %8, %126 : vector<2x128xi32>
    %cst_41 = arith.constant 0.000000e+00 : f32
    %128 = vector.shape_cast %125 : vector<1x1xf32> to vector<1x1xf32>
    %129 = vector.broadcast %128 : vector<1x1xf32> to vector<2x128xf32>
    %130 = vector.broadcast %cst_41 : f32 to vector<2x128xf32>
    %131 = arith.select %127, %129, %130 : vector<2x128xi1>, vector<2x128xf32>
    %132 = arith.addf %100, %131 : vector<2x128xf32>
    %c15 = arith.constant 15 : index
    %c0_42 = arith.constant 0 : index
    %133 = vector.load %arg4[%c15, %c0_42] : memref<19x1xf32, #tpu.memory_space<vmem>>, vector<1x1xf32>
    %c15_i32 = arith.constant 15 : i32
    %134 = vector.broadcast %c15_i32 : i32 to vector<2x128xi32>
    %135 = arith.cmpi eq, %8, %134 : vector<2x128xi32>
    %cst_43 = arith.constant 0.000000e+00 : f32
    %136 = vector.shape_cast %133 : vector<1x1xf32> to vector<1x1xf32>
    %137 = vector.broadcast %136 : vector<1x1xf32> to vector<2x128xf32>
    %138 = vector.broadcast %cst_43 : f32 to vector<2x128xf32>
    %139 = arith.select %135, %137, %138 : vector<2x128xi1>, vector<2x128xf32>
    %140 = arith.addf %108, %139 : vector<2x128xf32>
    %c16 = arith.constant 16 : index
    %c0_44 = arith.constant 0 : index
    %141 = vector.load %arg4[%c16, %c0_44] : memref<19x1xf32, #tpu.memory_space<vmem>>, vector<1x1xf32>
    %c16_i32 = arith.constant 16 : i32
    %142 = vector.broadcast %c16_i32 : i32 to vector<2x128xi32>
    %143 = arith.cmpi eq, %8, %142 : vector<2x128xi32>
    %cst_45 = arith.constant 0.000000e+00 : f32
    %144 = vector.shape_cast %141 : vector<1x1xf32> to vector<1x1xf32>
    %145 = vector.broadcast %144 : vector<1x1xf32> to vector<2x128xf32>
    %146 = vector.broadcast %cst_45 : f32 to vector<2x128xf32>
    %147 = arith.select %143, %145, %146 : vector<2x128xi1>, vector<2x128xf32>
    %148 = arith.addf %116, %147 : vector<2x128xf32>
    %c17 = arith.constant 17 : index
    %c0_46 = arith.constant 0 : index
    %149 = vector.load %arg4[%c17, %c0_46] : memref<19x1xf32, #tpu.memory_space<vmem>>, vector<1x1xf32>
    %c17_i32 = arith.constant 17 : i32
    %150 = vector.broadcast %c17_i32 : i32 to vector<2x128xi32>
    %151 = arith.cmpi eq, %8, %150 : vector<2x128xi32>
    %cst_47 = arith.constant 0.000000e+00 : f32
    %152 = vector.shape_cast %149 : vector<1x1xf32> to vector<1x1xf32>
    %153 = vector.broadcast %152 : vector<1x1xf32> to vector<2x128xf32>
    %154 = vector.broadcast %cst_47 : f32 to vector<2x128xf32>
    %155 = arith.select %151, %153, %154 : vector<2x128xi1>, vector<2x128xf32>
    %156 = arith.addf %124, %155 : vector<2x128xf32>
    %c18 = arith.constant 18 : index
    %c0_48 = arith.constant 0 : index
    %157 = vector.load %arg4[%c18, %c0_48] : memref<19x1xf32, #tpu.memory_space<vmem>>, vector<1x1xf32>
    %c18_i32 = arith.constant 18 : i32
    %158 = vector.broadcast %c18_i32 : i32 to vector<2x128xi32>
    %159 = arith.cmpi eq, %8, %158 : vector<2x128xi32>
    %cst_49 = arith.constant 0.000000e+00 : f32
    %160 = vector.shape_cast %157 : vector<1x1xf32> to vector<1x1xf32>
    %161 = vector.broadcast %160 : vector<1x1xf32> to vector<2x128xf32>
    %162 = vector.broadcast %cst_49 : f32 to vector<2x128xf32>
    %163 = arith.select %159, %161, %162 : vector<2x128xi1>, vector<2x128xf32>
    %164 = arith.addf %132, %163 : vector<2x128xf32>
    %165 = arith.addf %148, %156 : vector<2x128xf32>
    %166 = arith.addf %164, %140 : vector<2x128xf32>
    %167 = arith.addf %165, %166 : vector<2x128xf32>
    %c0_50 = arith.constant 0 : index
    %c0_51 = arith.constant 0 : index
    %168 = vector.load %arg3[%c0_50, %c0_51] : memref<2x128xf32, #tpu.memory_space<vmem>>, vector<2x128xf32>
    tpu.vector_store %arg3[%c0_50, %c0_51], %167 {strides = array<i32>} : memref<2x128xf32, #tpu.memory_space<vmem>>, vector<2x128xf32>,
    return
  }
}

</mosaic_0001>

<bundles_post_ra>
// kernel: rank_model_forward.1
= control target key start
LH: loop header
LB: loop body
LE: loop exit
PB: predicated region body
PF: predicated region fallthrough
CT: control target
= control target key end

     0   :  { %8 = vsyncpa [#allocation4], 0  ;;  %s456_s0 = inlined_call_operand.vmem [shape: s32[2,128], index: 0, kind: input, shape index: {}]   ;;  %s457_s1 = inlined_call_operand.hbm [shape: f32[19,256], index: 1, kind: input, shape index: {}]   ;;  %s458_s2 = inlined_call_operand.vmem [shape: f32[1,256], index: 2, kind: input, shape index: {}]   ;;  %s459_s3 = inlined_call_operand.hbm [shape: f32[2,128], index: 3, kind: output, shape index: {}]  }
   0x1   :  { %9 = vsyncpa [#allocation5], 0  ;;  %s350_s12 = smov [#allocation3]   ;;  %s302_s16 = scalar_lea.hbm %s457_s1, 768 }
   0x2   :  { %s17_s13 = sshll.u32 %s350_s12, 4  ;;  %p303_p0 = scmp.ne.s32.totalorder %s457_s1, %s302_s16  ;;  %s18_s13 = int_to_ptr.vmem [resolvable:$true] %s17_s13 }
   0x3   :  { %p306_p1 = scmp.lt.u32.totalorder %s302_s16, %s457_s1 }
   0x5   :  { %p308_p2 = pnand %p306_p1, %p303_p0 }
   0x7   :  { %311 = shalt.err (!%p308_p2)
}
   0x8   :  { %s312_s21 = scalar_lea.vmem %s18_s13, 768  ;;  %p317_p4 = scmp.lt.s32.totalorder %s18_s13, %s18_s13 }
   0x9   :  { %p313_p3 = scmp.ne.s32.totalorder %s18_s13, %s312_s21  ;;  %p318_p5 = scmp.lt.s32.totalorder %s312_s21, %s312_s21 }
   0xb   :  { %p319_p6 = por %p318_p5, %p317_p4 }
   0xd   :  { %p320_p7 = pnand %p319_p6, %p313_p3 }
   0xf   :  { %323 = shalt.err (!%p320_p7)
}
  0x10   :  { %s351_s22 = smov 256   ;;  %s352_s23 = smov 16  }
  0x11   :  { %23 = dma.hbm_to_vmem [thread:$0]  %s457_s1, 768, %s18_s13, [#allocation4], %s351_s22, %s351_s22, %s352_s23  }
  0x12   :  { %346 = dma.done.wait [#allocation4], 768  }
  0x13   :  { %347 = vsyncadd [#allocation4], 4294966528  ;;  %v43_v0 = vlaneseq  ;;  %v29_v1 = vld [vmem:[#allocation3] sm:$0xff]  ;;  %v30_v2 = vld [vmem:[#allocation3 + $0x8] sm:$0xff]  ;;  %vm65_vm0 = vcmask 1042432   ;;  %vm71_vm1 = vcmask 7168  }
  0x14   :  { %290 = vtanh.f32 %v29_v1  ;;  %v31_v4 = vld [vmem:[#allocation3 + $0x10] sm:$0xff]  ;;  %v32_v5 = vld [vmem:[#allocation3 + $0x18] sm:$0xff]  ;;  %v33_v6 = vld [vmem:[#allocation3 + $0x20] sm:$0x7]  ;;  %vm74_vm2 = vcmask 2048   ;;  %s353_s19 = smov [#allocation6]  }
  0x15   :  { %v44_v3 = vshrl.u32 %v43_v0, 7  ;;  %292 = vtanh.f32 %v30_v2  ;;  %v34_v7 = vld [vmem:[#allocation3 + $0x28] sm:$0x7]  ;;  %v41_v9 = vld [vmem:[%s458_s2] sm:$0x3]  ;;  %s239_s20 = sshll.u32 %s353_s19, 4  ;;  %s240_s20 = int_to_ptr.vmem [resolvable:$true] %s239_s20 }
  0x16   :  { %294 = vtanh.f32 %v31_v4  ;;  %v392_v52 = vld [vmem:[%s456_s0] sm:$0x3]  ;;  %s324_s21 = scalar_lea.vmem %s240_s20, 32  ;;  %p329_p9 = scmp.lt.s32.totalorder %s240_s20, %s240_s20 }
  0x17   :  { %v45_v8 = vsub.s32 0, %v44_v3  ;;  %296 = vtanh.f32 %v32_v5  ;;  %v49_v10 = vsub.s32 1, %v44_v3  ;;  %vm78_vm3 = vcmp.eq.s32.totalorder %v392_v52, 0  ;;  %p325_p8 = scmp.ne.s32.totalorder %s240_s20, %s324_s21  ;;  %p330_p10 = scmp.lt.s32.totalorder %s324_s21, %s324_s21 }
  0x18   :  { %298 = vtanh.f32 %v33_v6  ;;  %vm86_vm4 = vcmp.eq.s32.totalorder %v392_v52, 1  ;;  %vm94_vm5 = vcmp.eq.s32.totalorder %v392_v52, 2  ;;  %vm102_vm6 = vcmp.eq.s32.totalorder %v392_v52, 3 }
  0x19   :  { %300 = vtanh.f32 %v34_v7  ;;  %v46_v11 = vrot.slane %v41_v9, %v45_v8  ;;  %v50_v12 = vrot.slane %v41_v9, %v49_v10  ;;  %vm110_vm7 = vcmp.eq.s32.totalorder %v392_v52, 4  ;;  %p331_p11 = por %p330_p10, %p329_p9 }
  0x1a   :  { %vm118_vm8 = vcmp.eq.s32.totalorder %v392_v52, 5  ;;  %vm126_vm9 = vcmp.eq.s32.totalorder %v392_v52, 6  ;;  %vm134_vm10 = vcmp.eq.s32.totalorder %v392_v52, 7  ;;  %vm142_vm11 = vcmp.eq.s32.totalorder %v392_v52, 8 }
  0x1b   :  { %vm150_vm12 = vcmp.eq.s32.totalorder %v392_v52, 9  ;;  %vm158_vm13 = vcmp.eq.s32.totalorder %v392_v52, 10  ;;  %vm166_vm14 = vcmp.eq.s32.totalorder %v392_v52, 11  ;;  %vm174_vm15 = vcmp.eq.s32.totalorder %v392_v52, 12  ;;  %p332_p12 = pnand %p331_p11, %p325_p8 }
  0x1e   :  { %v291_v13 = vpop.eup %290 }
  0x1f   :  { %v293_v14 = vpop.eup %292  ;;  %v53_v15 = vmul.f32 %v291_v13, %v46_v11 }
  0x20   :  { %v295_v16 = vpop.eup %294  ;;  %v54_v17 = vmul.f32 %v293_v14, %v50_v12 }
  0x21   :  { %v297_v18 = vpop.eup %296  ;;  %v55_v19 = vmul.f32 %v295_v16, %v46_v11 }
  0x22   :  { %v299_v20 = vpop.eup %298  ;;  %v59_v21 = vadd.f32 %v54_v17, %v53_v15  ;;  %v56_v22 = vmul.f32 %v297_v18, %v50_v12 }
  0x23   :  { %v301_v23 = vpop.eup %300  ;;  %v57_v24 = vmul.f32 %v299_v20, %v46_v11 }
  0x24   :  { %60 = vadd.xlane.f32.xlu0 %v59_v21  ;;  %v62_v25 = vadd.f32 %v56_v22, %v55_v19  ;;  %v58_v26 = vmul.f32 %v301_v23, %v50_v12 }
  0x25   :  { %v66_v27 = vsel %vm65_vm0, %v57_v24, 0.0 }
  0x26   :  { %v67_v28 = vsel %vm65_vm0, %v58_v26, 0.0  ;;  %vm182_vm0 = vcmp.eq.s32.totalorder %v392_v52, 13 }
  0x27   :  { %v68_v29 = vadd.f32 %v67_v28, %v66_v27 }
  0x28   :  { %63 = vadd.xlane.f32.xlu0 %v62_v25 }
  0x29   :  { %69 = vadd.xlane.f32.xlu1 %v68_v29 }
  0xb1   :  { %v61_v30 = vpop.xlane.xlu0 %60 }
  0xb2   :  { %72 = vst.msk [vmem:[#allocation2] sm:$0xff] %vm71_vm1, %v61_v30 }
  0xb5   :  { %v64_v31 = vpop.xlane.xlu0 %63 }
  0xb6   :  { %73 = vst.msk [vmem:[#allocation2 + $0x8] sm:$0xff] %vm71_vm1, %v64_v31  ;;  %v70_v32 = vpop.xlane.xlu1 %69  ;;  %vm190_vm1 = vcmp.eq.s32.totalorder %v392_v52, 14 }
  0xb7   :  { %75 = vst.msk [vmem:[#allocation2 + $0x10] sm:$0x7] %vm74_vm2, %v70_v32  ;;  %vm198_vm2 = vcmp.eq.s32.totalorder %v392_v52, 15 }
  0xb9   :  { %v77_v33 = vld [vmem:[#allocation2] sm:$0x1]  ;;  %v85_v34 = vld [vmem:[#allocation2 + $0x1] sm:$0x1]  ;;  %v93_v35 = vld [vmem:[#allocation2 + $0x2] sm:$0x1] }
  0xba   :  { %248 = vpush %v77_v33  ;;  %v101_v36 = vld [vmem:[#allocation2 + $0x3] sm:$0x1]  ;;  %v109_v37 = vld [vmem:[#allocation2 + $0x4] sm:$0x1]  ;;  %v117_v38 = vld [vmem:[#allocation2 + $0x5] sm:$0x1] }
  0xbb   :  { %250 = vpush %v85_v34  ;;  %v125_v39 = vld [vmem:[#allocation2 + $0x6] sm:$0x1]  ;;  %v133_v40 = vld [vmem:[#allocation2 + $0x7] sm:$0x1] }
  0xbc   :  { %252 = vpush %v93_v35 }
  0xbd   :  { %254 = vpush %v101_v36  ;;  %v141_v41 = vld [vmem:[#allocation2 + $0x8] sm:$0x1]  ;;  %v149_v42 = vld [vmem:[#allocation2 + $0x9] sm:$0x1]  ;;  %v157_v43 = vld [vmem:[#allocation2 + $0xa] sm:$0x1] }
  0xbe   :  { %256 = vpush %v109_v37  ;;  %v165_v44 = vld [vmem:[#allocation2 + $0xb] sm:$0x1]  ;;  %v173_v45 = vld [vmem:[#allocation2 + $0xc] sm:$0x1]  ;;  %v181_v46 = vld [vmem:[#allocation2 + $0xd] sm:$0x1] }
  0xbf   :  { %258 = vpush %v117_v38  ;;  %v189_v47 = vld [vmem:[#allocation2 + $0xe] sm:$0x1]  ;;  %v197_v48 = vld [vmem:[#allocation2 + $0xf] sm:$0x1]  ;;  %v205_v49 = vld [vmem:[#allocation2 + $0x10] sm:$0x1] }
  0xc0   :  { %260 = vpush %v125_v39  ;;  %v213_v50 = vld [vmem:[#allocation2 + $0x11] sm:$0x1]  ;;  %v221_v51 = vld [vmem:[#allocation2 + $0x12] sm:$0x1] }
  0xc1   :  { %262 = vpush %v133_v40 }
  0xc2   :  { %264 = vpush %v141_v41 }
  0xc3   :  { %266 = vpush %v149_v42 }
  0xc4   :  { %268 = vpush %v157_v43 }
  0xc5   :  { %270 = vpush %v165_v44 }
  0xc6   :  { %272 = vpush %v173_v45 }
  0xc7   :  { %274 = vpush %v181_v46 }
  0xc8   :  { %276 = vpush %v189_v47 }
  0xc9   :  { %278 = vpush %v197_v48 }
  0xca   :  { %280 = vpush %v205_v49 }
  0xcb   :  { %282 = vpush %v213_v50 }
  0xcc   :  { %284 = vpush %v221_v51 }
  0xeb   :  { %s249_s28 = spop %248 }
  0xec   :  { %s251_s29 = spop %250  ;;  %v81_v53 = vstv %s249_s28 }
  0xed   :  { %s253_s30 = spop %252  ;;  %v89_v54 = vstv %s251_s29  ;;  %v83_v57 = vsel %vm78_vm3, %v81_v53, 0.0  ;;  %vm206_vm3 = vcmp.eq.s32.totalorder %v392_v52, 16 }
  0xee   :  { %s398_s4 = spop %254  ;;  %v97_v55 = vstv %s253_s30  ;;  %v91_v60 = vsel %vm86_vm4, %v89_v54, 0.0  ;;  %vm214_vm4 = vcmp.eq.s32.totalorder %v392_v52, 17 }
  0xef   :  { %s257_s0 = spop %256  ;;  %v105_v61 = vstv %s398_s4  ;;  %v99_v0 = vsel %vm94_vm5, %v97_v55, 0.0  ;;  %vm222_vm5 = vcmp.eq.s32.totalorder %v392_v52, 18 }
  0xf0   :  { %v113_v56 = vstv %s257_s0  ;;  %s259_s5 = spop %258  ;;  %v107_v5 = vsel %vm102_vm6, %v105_v61, 0.0 }
  0xf1   :  { %v115_v58 = vsel %vm110_vm7, %v113_v56, 0.0  ;;  %v121_v59 = vstv %s259_s5  ;;  %s261_s6 = spop %260 }
  0xf2   :  { %v123_v62 = vsel %vm118_vm8, %v121_v59, 0.0  ;;  %v129_v63 = vstv %s261_s6  ;;  %s263_s7 = spop %262  ;;  %v116_v2 = vadd.f32 %v115_v58, %v83_v57 }
  0xf3   :  { %v131_v1 = vsel %vm126_vm9, %v129_v63, 0.0  ;;  %s265_s8 = spop %264  ;;  %v137_v3 = vstv %s263_s7  ;;  %v124_v6 = vadd.f32 %v123_v62, %v91_v60 }
  0xf4   :  { %v145_v4 = vstv %s265_s8  ;;  %s267_s9 = spop %266  ;;  %v132_v9 = vadd.f32 %v131_v1, %v99_v0  ;;  %v139_v13 = vsel %vm134_vm10, %v137_v3, 0.0 }
  0xf5   :  { %v147_v7 = vsel %vm142_vm11, %v145_v4, 0.0  ;;  %v153_v8 = vstv %s267_s9  ;;  %s269_s10 = spop %268  ;;  %v140_v22 = vadd.f32 %v139_v13, %v107_v5 }
  0xf6   :  { %v148_v10 = vadd.f32 %v147_v7, %v116_v2  ;;  %v155_v11 = vsel %vm150_vm12, %v153_v8, 0.0  ;;  %v161_v12 = vstv %s269_s10  ;;  %s271_s11 = spop %270 }
  0xf7   :  { %v156_v14 = vadd.f32 %v155_v11, %v124_v6  ;;  %v163_v15 = vsel %vm158_vm13, %v161_v12, 0.0  ;;  %v169_v16 = vstv %s271_s11  ;;  %s273_s12 = spop %272 }
  0xf8   :  { %v164_v17 = vadd.f32 %v163_v15, %v132_v9  ;;  %v177_v18 = vstv %s273_s12  ;;  %s275_s13 = spop %274  ;;  %v171_v19 = vsel %vm166_vm14, %v169_v16, 0.0 }
  0xf9   :  { %v179_v20 = vsel %vm174_vm15, %v177_v18, 0.0  ;;  %v185_v21 = vstv %s275_s13  ;;  %s277_s14 = spop %276  ;;  %v172_v28 = vadd.f32 %v171_v19, %v140_v22 }
  0xfa   :  { %v180_v23 = vadd.f32 %v179_v20, %v148_v10  ;;  %v187_v24 = vsel %vm182_vm0, %v185_v21, 0.0  ;;  %v193_v25 = vstv %s277_s14  ;;  %s279_s15 = spop %278 }
  0xfb   :  { %v188_v26 = vadd.f32 %v187_v24, %v156_v14  ;;  %v195_v27 = vsel %vm190_vm1, %v193_v25, 0.0  ;;  %s281_s16 = spop %280  ;;  %v201_v30 = vstv %s279_s15 }
  0xfc   :  { %v196_v29 = vadd.f32 %v195_v27, %v164_v17  ;;  %v209_v31 = vstv %s281_s16  ;;  %s283_s17 = spop %282  ;;  %v203_v37 = vsel %vm198_vm2, %v201_v30, 0.0 }
  0xfd   :  { %v211_v32 = vsel %vm206_vm3, %v209_v31, 0.0  ;;  %v217_v33 = vstv %s283_s17  ;;  %s285_s18 = spop %284  ;;  %v204_v40 = vadd.f32 %v203_v37, %v172_v28 }
  0xfe   :  { %v212_v34 = vadd.f32 %v211_v32, %v180_v23  ;;  %v219_v35 = vsel %vm214_vm4, %v217_v33, 0.0  ;;  %v225_v36 = vstv %s285_s18 }
  0xff   :  { %v220_v38 = vadd.f32 %v219_v35, %v188_v26  ;;  %v227_v39 = vsel %vm222_vm5, %v225_v36, 0.0 }
 0x100   :  { %v228_v41 = vadd.f32 %v227_v39, %v196_v29 }
 0x101   :  { %v229_v42 = vadd.f32 %v220_v38, %v212_v34 }
 0x102   :  { %v230_v43 = vadd.f32 %v228_v41, %v204_v40 }
 0x104   :  { %v231_v44 = vadd.f32 %v230_v43, %v229_v42 }
 0x106   :  { %232 = vst [vmem:[#allocation6] sm:$0x3] %v231_v44 }
 0x107   :  { %335 = shalt.err (!%p332_p12)
}
 0x108   :  { %s336_s24 = scalar_lea.hbm %s459_s3, 32 }
 0x109   :  { %p337_p13 = scmp.ne.s32.totalorder %s459_s3, %s336_s24  ;;  %p340_p0 = scmp.lt.u32.totalorder %s336_s24, %s459_s3 }
 0x10b   :  { %p342_p1 = pnand %p340_p0, %p337_p13 }
 0x10d   :  { %345 = shalt.err (!%p342_p1)
}
 0x10e   :  { %242 = dma.vmem_to_hbm [thread:$0]  %s240_s20, 32, %s459_s3, [#allocation5]  }
 0x10f   :  { %348 = dma.done.wait [#allocation5], 32  }
 0x110   :  { %349 = vsyncadd [#allocation5], 4294967264 }
 0x111   :  { %246 = vsyncpa [#allocation4], 1 }
 0x112   :  { %247 = vsyncpa [#allocation5], 1 }

</bundles_post_ra>
